<compile_context>
chip_gen: v7x
topology: tpu7x:2x2x1
jax: 0.10.0
libtpu: 0.0.40
codegen_flags: <defaults>
</compile_context>

<pallas_src>
import functools

import jax
import jax.numpy as jnp
from jax.experimental import pallas as pl
from jax.experimental.pallas import tpu as pltpu


def _ffn_kernel(x_ref, w1_ref, b1_ref, w2_ref, b2_ref, o_ref, acc_ref, *,
                activation, approximate_gelu):
    # x_ref:  (tm, d_model)      w1_ref: (d_model, tff)   b1_ref: (1, tff)
    # w2_ref: (tff, d_model)     b2_ref: (1, d_model)
    # o_ref:  (tm, d_model)      acc_ref: (tm, d_model) f32 scratch
    k = pl.program_id(1)

    @pl.when(k == 0)
    def _():
        # Seed the accumulator with the fc2 bias: saves a (tm, d_model) f32 add
        # in the epilogue of every token tile.
        acc_ref[...] = jnp.broadcast_to(
            b2_ref[...].astype(jnp.float32), acc_ref.shape)

    # fc1 on this d_ff chunk: native-dtype operands, f32 MXU accumulation.
    h = jnp.dot(x_ref[...], w1_ref[...], preferred_element_type=jnp.float32)
    h = h + b1_ref[...].astype(jnp.float32)

    # Activation (elementwise, fuses per d_ff chunk).
    if activation == "gelu":
        if approximate_gelu:
            h = jax.nn.gelu(h, approximate=True)   # tanh GELU -> EUP slot
        else:
            # Exact erf-based GELU, matching torch.nn.GELU() default.
            # NOTE: lowers to a VPU polynomial; flip approximate_gelu=True if the
            # kernel becomes VALU-bound once weights are resident (v6e).
            h = 0.5 * h * (1.0 + jax.lax.erf(h * jnp.float32(0.7071067811865476)))
    else:
        h = jnp.maximum(h, 0.0)

    # Dropout (eval mode) == identity.
    # TODO(synk): training-mode dropout via pltpu.prng_seed / prng_random_bits.

    # fc2 partial product for this chunk, accumulated in f32.
    acc_ref[...] += jnp.dot(h.astype(w2_ref.dtype), w2_ref[...],
                            preferred_element_type=jnp.float32)

    @pl.when(k == pl.num_programs(1) - 1)
    def _():
        o_ref[...] = acc_ref[...].astype(o_ref.dtype)


def _round_up(x, m):
    return (x + m - 1) // m * m


def _sublane_tile(dtype):
    # Native second-to-last tile per dtype width: f32 -> 8, bf16 -> 16, i8/fp8 -> 32.
    return {4: 8, 2: 16, 1: 32}.get(jnp.dtype(dtype).itemsize, 8)


def _vmem_capacity_bytes():
    try:
        return int(pltpu.get_tpu_info().vmem_capacity_bytes)
    except Exception:
        return 64 << 20   # conservative (v7x-sized) fallback


def _vmem_need_bytes(tm, tff, d_model, x_b, w_b):
    return (2 * tm * d_model * x_b            # x tiles (double-buffered)
            + 2 * tm * d_model * x_b          # out tiles (double-buffered)
            + 4 * d_model * tff * w_b         # w1 + w2 tiles (double-buffered)
            + 2 * (tff + d_model) * w_b       # bias tiles
            + tm * d_model * 4                # f32 accumulator scratch
            + tm * tff * 4)                   # f32 hidden chunk (internal)


def _largest_divisor_tff(d_ff, want):
    """Largest lane-aligned (mult-of-128) divisor of d_ff <= want, else d_ff."""
    if d_ff <= want:
        return d_ff
    cand = (min(want, d_ff) // 128) * 128
    while cand >= 128:
        if d_ff % cand == 0:
            return cand
        cand -= 128
    return d_ff   # no lane-aligned divisor; keep full d_ff (non-dividing tiles on
                  # the reduction axis would read undefined OOB weights -> unsafe).


def ffn_pallas(x, w1, b1, w2, b2, *, activation="gelu", approximate_gelu=False,
               tm=512, tff=None):
    """x: (N, d_model) token-major.  Returns (N, d_model)."""
    n, d_model = x.shape
    d_ff = w1.shape[1]
    x_b = jnp.dtype(x.dtype).itemsize
    w_b = jnp.dtype(w1.dtype).itemsize
    sublane = _sublane_tile(x.dtype)

    # Per-chip VMEM limit (v7x: 64 MiB/TC; v5e/v6e: 128 MiB) with headroom for
    # Mosaic internal scratch.
    capacity = _vmem_capacity_bytes()
    vmem_limit = int(min(max(capacity - (12 << 20), 32 << 20), 112 << 20))
    budget = vmem_limit - (6 << 20)

    # ---- Token tile -------------------------------------------------------
    tm = max(sublane, min(tm, _round_up(n, sublane)))
    # Megacore (v7x): expose at least 2 token tiles so both TensorCores get work.
    if n > sublane and pl.cdiv(n, tm) < 2:
        tm = max(sublane, _round_up(pl.cdiv(n, 2), sublane))

    # ---- d_ff tile ---------------------------------------------------------
    if tff is None:
        if _vmem_need_bytes(tm, d_ff, d_model, x_b, w_b) <= budget:
            # Resident-weights fast path: constant weight index maps -> each
            # weight is DMA'd from HBM exactly once for the whole call.
            tff = d_ff
        else:
            # Size the streamed chunk so double-buffered w1+w2 stay ~40% of budget.
            w_budget = int(0.4 * budget)
            want = max(128, (w_budget // (4 * d_model * w_b)) // 128 * 128)
            tff = _largest_divisor_tff(d_ff, want)
    else:
        tff = _largest_divisor_tff(d_ff, tff)

    # Last resort: shrink the token tile until the configuration fits the budget.
    while _vmem_need_bytes(tm, tff, d_model, x_b, w_b) > budget and tm > sublane:
        tm = max(sublane, _round_up(tm // 2, sublane))

    n_i = pl.cdiv(n, tm)
    n_k = pl.cdiv(d_ff, tff)   # tff divides d_ff or equals it

    b1_2d = b1.reshape(1, d_ff)
    b2_2d = b2.reshape(1, d_model)

    kernel = functools.partial(_ffn_kernel, activation=activation,
                               approximate_gelu=approximate_gelu)

    weight_bytes = 2 * d_model * d_ff * w_b
    cost = pl.CostEstimate(
        flops=4 * n * d_model * d_ff,
        transcendentals=n * d_ff if activation == "gelu" else 0,
        bytes_accessed=(2 * n * d_model * x_b
                        + (1 if n_k == 1 else n_i) * weight_bytes),
    )

    out = pl.pallas_call(
        kernel,
        out_shape=jax.ShapeDtypeStruct((n, d_model), x.dtype),
        grid_spec=pltpu.PrefetchScalarGridSpec(
            num_scalar_prefetch=0,
            grid=(n_i, n_k),
            in_specs=[
                pl.BlockSpec((tm, d_model), lambda i, k: (i, 0)),   # x tile
                # TODO(synk): sweep pipeline_mode=pl.Buffered(3) on w1/w2 for v5e
                # if the profile shows exposed weight DMA (don't carry to v7x).
                pl.BlockSpec((d_model, tff), lambda i, k: (0, k)),  # w1 chunk
                pl.BlockSpec((1, tff), lambda i, k: (0, k)),        # b1 chunk
                pl.BlockSpec((tff, d_model), lambda i, k: (k, 0)),  # w2 chunk
                pl.BlockSpec((1, d_model), lambda i, k: (0, 0)),    # b2
            ],
            out_specs=pl.BlockSpec((tm, d_model), lambda i, k: (i, 0)),
            scratch_shapes=[pltpu.VMEM((tm, d_model), jnp.float32)],
        ),
        compiler_params=pltpu.CompilerParams(
            dimension_semantics=("parallel", "arbitrary"),
            vmem_limit_bytes=vmem_limit,
        ),
        cost_estimate=cost,
    )(x, w1, b1_2d, w2, b2_2d)

    return out


def ffn_forward(inputs, params, *, activation="gelu", approximate_gelu=False,
                tm=512, tff=None):
    """inputs: (batch, seq, d_model), like the PyTorch module."""
    b, s, d_model = inputs.shape
    x2d = inputs.reshape(b * s, d_model)
    y2d = ffn_pallas(x2d, params["w1"], params["b1"], params["w2"], params["b2"],
                     activation=activation, approximate_gelu=approximate_gelu,
                     tm=tm, tff=tff)
    return y2d.reshape(b, s, d_model)


def init_ffn_params(key, d_model, d_ff, dtype=jnp.float32):
    """Deterministic init mimicking nn.Linear's U(-1/sqrt(fan_in), 1/sqrt(fan_in))."""
    k1, k2, k3, k4 = jax.random.split(key, 4)
    bound1 = 1.0 / jnp.sqrt(d_model)
    bound2 = 1.0 / jnp.sqrt(d_ff)
    return {
        # stored as (in_features, out_features) so the kernel does x @ w
        "w1": jax.random.uniform(k1, (d_model, d_ff), dtype, -bound1, bound1),
        "b1": jax.random.uniform(k2, (d_ff,), dtype, -bound1, bound1),
        "w2": jax.random.uniform(k3, (d_ff, d_model), dtype, -bound2, bound2),
        "b2": jax.random.uniform(k4, (d_model,), dtype, -bound2, bound2),
    }


def ffn_reference(inputs, params, *, activation="gelu"):
    h = jnp.einsum("bsd,df->bsf", inputs, params["w1"]) + params["b1"]
    if activation == "gelu":
        h = 0.5 * h * (1.0 + jax.lax.erf(h / jnp.sqrt(2.0)))
    else:
        h = jnp.maximum(h, 0.0)
    return jnp.einsum("bsf,fd->bsd", h, params["w2"]) + params["b2"]


if __name__ == "__main__":
    # Small but lane-dense self-test shapes (d_model multiple of 128).
    batch, seq, d_model, d_ff = 2, 8, 128, 256

    key = jax.random.PRNGKey(0)
    kx, kx2, kp = jax.random.split(key, 3)
    params = init_ffn_params(kp, d_model, d_ff)

    # GELU (torch default, exact erf) path; resident weights, 2 token tiles.
    x = jax.random.normal(kx, (batch, seq, d_model), jnp.float32)
    out = jax.block_until_ready(ffn_forward(x, params, activation="gelu"))
    ref = ffn_reference(x, params, activation="gelu")
    assert out.shape == (batch, seq, d_model)
    assert jnp.allclose(out, ref, atol=1e-4, rtol=1e-4), "gelu mismatch vs reference"

    # ReLU path with a ragged token count (exercises the partial last token tile,
    # no jnp.pad round-trip).
    x2 = jax.random.normal(kx2, (batch, seq - 3, d_model), jnp.float32)
    out2 = jax.block_until_ready(ffn_forward(x2, params, activation="relu"))
    ref2 = ffn_reference(x2, params, activation="relu")
    assert out2.shape == x2.shape
    assert jnp.allclose(out2, ref2, atol=1e-4, rtol=1e-4), "relu mismatch vs reference"

    print("KERNEL_OK")
</pallas_src>

<mosaic_0001>
module attributes {stable_mosaic.version = 11 : i64} {
  func.func @_ffn_kernel(%arg0: i32, %arg1: i32, %arg2: memref<8x128xf32, #tpu.memory_space<vmem>>, %arg3: memref<128x256xf32, #tpu.memory_space<vmem>>, %arg4: memref<1x256xf32, #tpu.memory_space<vmem>>, %arg5: memref<256x128xf32, #tpu.memory_space<vmem>>, %arg6: memref<1x128xf32, #tpu.memory_space<vmem>>, %arg7: memref<8x128xf32, #tpu.memory_space<vmem>>, %arg8: memref<8x128xf32, #tpu.memory_space<vmem>>) attributes {dimension_semantics = [#tpu.dimension_semantics<parallel>, #tpu.dimension_semantics<arbitrary>], iteration_bounds = array<i64: 2, 1>, scalar_prefetch = 0 : i64, scratch_operands = 1 : i64, tpu.core_type = #tpu.core_type<tc>, window_params = [{transform_indices = @transform_0, window_bounds = array<i64: 8, 128>}, {transform_indices = @transform_1, window_bounds = array<i64: 128, 256>}, {transform_indices = @transform_2, window_bounds = array<i64: 1, 256>}, {transform_indices = @transform_3, window_bounds = array<i64: 256, 128>}, {pipeline_mode = #tpu.pipeline_mode<synchronous>, transform_indices = @transform_4, window_bounds = array<i64: 1, 128>}, {transform_indices = @transform_5, window_bounds = array<i64: 8, 128>}]} {
    %c0_i32 = arith.constant 0 : i32
    %0 = arith.cmpi eq, %arg1, %c0_i32 : i32
    %1 = arith.extui %0 : i1 to i32
    %c0_i32_0 = arith.constant 0 : i32
    %2 = arith.cmpi ne, %1, %c0_i32_0 : i32
    scf.if %2 {
      %c0_18 = arith.constant 0 : index
      %c0_19 = arith.constant 0 : index
      %25 = vector.load %arg6[%c0_18, %c0_19] : memref<1x128xf32, #tpu.memory_space<vmem>>, vector<1x128xf32>
      %26 = vector.shape_cast %25 : vector<1x128xf32> to vector<1x128xf32>
      %27 = vector.broadcast %26 : vector<1x128xf32> to vector<8x128xf32>
      %c0_20 = arith.constant 0 : index
      %c0_21 = arith.constant 0 : index
      %28 = vector.load %arg8[%c0_20, %c0_21] : memref<8x128xf32, #tpu.memory_space<vmem>>, vector<8x128xf32>
      tpu.vector_store %arg8[%c0_20, %c0_21], %27 {strides = array<i32>} : memref<8x128xf32, #tpu.memory_space<vmem>>, vector<8x128xf32>,
    } else {
    }
    %c0 = arith.constant 0 : index
    %c0_1 = arith.constant 0 : index
    %3 = vector.load %arg2[%c0, %c0_1] : memref<8x128xf32, #tpu.memory_space<vmem>>, vector<8x128xf32>
    %c0_2 = arith.constant 0 : index
    %c0_3 = arith.constant 0 : index
    %4 = vector.load %arg3[%c0_2, %c0_3] : memref<128x256xf32, #tpu.memory_space<vmem>>, vector<128x256xf32>
    %cst = arith.constant dense<0.000000e+00> : vector<8x256xf32>
    %5 = tpu.matmul %3, %4, %cst {dimension_numbers = #tpu.dot_dimension_numbers<[1], [0], [0], [1], [0, 0, 1, 1], [], []>} : vector<8x128xf32>, vector<128x256xf32>, vector<8x256xf32> -> vector<8x256xf32>
    %c0_4 = arith.constant 0 : index
    %c0_5 = arith.constant 0 : index
    %6 = vector.load %arg4[%c0_4, %c0_5] : memref<1x256xf32, #tpu.memory_space<vmem>>, vector<1x256xf32>
    %7 = vector.broadcast %6 : vector<1x256xf32> to vector<8x256xf32>
    %8 = arith.addf %5, %7 : vector<8x256xf32>
    %cst_6 = arith.constant 5.000000e-01 : f32
    %9 = vector.broadcast %cst_6 : f32 to vector<8x256xf32>
    %10 = arith.mulf %9, %8 : vector<8x256xf32>
    %cst_7 = arith.constant 0.707106769 : f32
    %11 = vector.broadcast %cst_7 : f32 to vector<8x256xf32>
    %12 = arith.mulf %8, %11 : vector<8x256xf32>
    %13 = math.erf %12 : vector<8x256xf32>
    %cst_8 = arith.constant 1.000000e+00 : f32
    %14 = vector.broadcast %cst_8 : f32 to vector<8x256xf32>
    %15 = arith.addf %14, %13 : vector<8x256xf32>
    %16 = arith.mulf %10, %15 : vector<8x256xf32>
    %c0_9 = arith.constant 0 : index
    %c0_10 = arith.constant 0 : index
    %17 = vector.load %arg8[%c0_9, %c0_10] : memref<8x128xf32, #tpu.memory_space<vmem>>, vector<8x128xf32>
    %c0_11 = arith.constant 0 : index
    %c0_12 = arith.constant 0 : index
    %18 = vector.load %arg5[%c0_11, %c0_12] : memref<256x128xf32, #tpu.memory_space<vmem>>, vector<256x128xf32>
    %cst_13 = arith.constant dense<0.000000e+00> : vector<8x128xf32>
    %19 = tpu.matmul %16, %18, %cst_13 {dimension_numbers = #tpu.dot_dimension_numbers<[1], [0], [0], [1], [0, 0, 1, 1], [], []>} : vector<8x256xf32>, vector<256x128xf32>, vector<8x128xf32> -> vector<8x128xf32>
    %20 = arith.addf %17, %19 : vector<8x128xf32>
    %c0_14 = arith.constant 0 : index
    %c0_15 = arith.constant 0 : index
    %21 = vector.load %arg8[%c0_14, %c0_15] : memref<8x128xf32, #tpu.memory_space<vmem>>, vector<8x128xf32>
    tpu.vector_store %arg8[%c0_14, %c0_15], %20 {strides = array<i32>} : memref<8x128xf32, #tpu.memory_space<vmem>>, vector<8x128xf32>,
    %c0_i32_16 = arith.constant 0 : i32
    %22 = arith.cmpi eq, %arg1, %c0_i32_16 : i32
    %23 = arith.extui %22 : i1 to i32
    %c0_i32_17 = arith.constant 0 : i32
    %24 = arith.cmpi ne, %23, %c0_i32_17 : i32
    scf.if %24 {
      %c0_18 = arith.constant 0 : index
      %c0_19 = arith.constant 0 : index
      %25 = vector.load %arg8[%c0_18, %c0_19] : memref<8x128xf32, #tpu.memory_space<vmem>>, vector<8x128xf32>
      %c0_20 = arith.constant 0 : index
      %c0_21 = arith.constant 0 : index
      %26 = vector.load %arg7[%c0_20, %c0_21] : memref<8x128xf32, #tpu.memory_space<vmem>>, vector<8x128xf32>
      tpu.vector_store %arg7[%c0_20, %c0_21], %25 {strides = array<i32>} : memref<8x128xf32, #tpu.memory_space<vmem>>, vector<8x128xf32>,
    } else {
    }
    return
  }
  func.func @transform_0(%arg0: i32, %arg1: i32) -> (i32, i32) {
    %c0_i32 = arith.constant 0 : i32
    %c0_i32_0 = arith.constant 0 : i32
    return %arg0, %c0_i32 : i32, i32
  }
  func.func @transform_1(%arg0: i32, %arg1: i32) -> (i32, i32) {
    %c0_i32 = arith.constant 0 : i32
    %c0_i32_0 = arith.constant 0 : i32
    return %c0_i32, %arg1 : i32, i32
  }
  func.func @transform_2(%arg0: i32, %arg1: i32) -> (i32, i32) {
    %c0_i32 = arith.constant 0 : i32
    %c0_i32_0 = arith.constant 0 : i32
    return %c0_i32, %arg1 : i32, i32
  }
  func.func @transform_3(%arg0: i32, %arg1: i32) -> (i32, i32) {
    %c0_i32 = arith.constant 0 : i32
    %c0_i32_0 = arith.constant 0 : i32
    return %arg1, %c0_i32 : i32, i32
  }
  func.func @transform_4(%arg0: i32, %arg1: i32) -> (i32, i32) {
    %c0_i32 = arith.constant 0 : i32
    %c0_i32_0 = arith.constant 0 : i32
    %c0_i32_1 = arith.constant 0 : i32
    return %c0_i32, %c0_i32_0 : i32, i32
  }
  func.func @transform_5(%arg0: i32, %arg1: i32) -> (i32, i32) {
    %c0_i32 = arith.constant 0 : i32
    %c0_i32_0 = arith.constant 0 : i32
    return %arg0, %c0_i32 : i32, i32
  }
}

</mosaic_0001>

<bundles_post_ra>
// kernel: tpu_custom_call.1
= control target key start
LH: loop header
LB: loop body
LE: loop exit
PB: predicated region body
PF: predicated region fallthrough
CT: control target
= control target key end

     0   :  { %10 = vsyncpa [#allocation4], 0  ;;  %s1379_s0 = inlined_call_operand.hbm [shape: f32[16,128], index: 0, kind: input, shape index: {}]   ;;  %s1380_s1 = inlined_call_operand.hbm [shape: f32[128,256], index: 1, kind: input, shape index: {}]   ;;  %s1381_s2 = inlined_call_operand.vmem [shape: f32[1,256], index: 2, kind: input, shape index: {}]   ;;  %s1382_s3 = inlined_call_operand.hbm [shape: f32[256,128], index: 3, kind: input, shape index: {}]   ;;  %s1383_s4 = inlined_call_operand.vmem [shape: f32[1,128], index: 4, kind: input, shape index: {}]   ;;  %s1384_s5 = inlined_call_operand.hbm [shape: f32[16,128], index: 5, kind: output, shape index: {}]  }
   0x1   :  { %12 = vsyncpa [#allocation4 + $0x1], 0 }
   0x2   :  { %13 = vsyncpa [#allocation7], 0 }
   0x3   :  { %14 = vsyncpa [#allocation5], 0 }
   0x4   :  { %16 = vsyncpa [#allocation5 + $0x1], 0  ;;  %s1116_s18 = smov 0   ;;  %s1118_s19 = smov 0  }
   0x5   :  { %s1120_s20 = smov 0   ;;  %s1122_s21 = smov 0  }
   0x6   :  { %s1124_s22 = smov 0   ;;  %s1126_s23 = smov 0  }
   0x7 LB: > { %s693_s24 = sadd.s32 4294967295, %s1075_s23   ;;  %s694_s25 = sadd.s32 4294967294, %s1075_s23   ;;  %s1075_s23 = sphi %s1126_s23, %s22_s23   ;;  %s1071_s22 = sphi %s1124_s22, %s1406_s22   ;;  %s1067_s21 = sphi %s1122_s21, %s1405_s21   ;;  %s1063_s20 = sphi %s1120_s20, %s1404_s20   ;;  %s1059_s19 = sphi %s1118_s19, %s1403_s19   ;;  %s1055_s18 = sphi %s1116_s18, %s1402_s18  }
   0x8   : > { %p54_p0 = scmp.ne.s32.totalorder %s1059_s19, %s1055_s18  ;;  %p1150_p1 = scmp.eq.s32.totalorder %s693_s24, 0 }
   0x9   : > { %p1154_p2 = scmp.eq.s32.totalorder %s693_s24, 1  ;;  %p183_p3 = scmp.eq.s32.totalorder %s694_s25, 1 }
   0xa   : > { %s1389_s26 = scalar_select %p1150_p1, 1, 0 }
   0xb   : > { %p1160_p4 = por %p1150_p1, %p54_p0  ;;  %p695_p5 = scmp.ge.s32.totalorder %s1075_s23, 1 }
   0xc   : > { %p1165_p6 = por %p183_p3, %p54_p0  ;;  %p190_p7 = scmp.lt.s32.totalorder %s1075_s23, 3 }
   0xd   : > { %s1391_s28 = scalar_select %p1160_p4, 1, 0 }
   0xe   : > { %s1392_s29 = scalar_select %p1165_p6, 1, 0 }
   0xf   : > { %p1170_p8 = pnand %p695_p5, %p190_p7  ;;  %s1077_s6 = smov [#allocation6]  }
  0x10   : > { %s205_s7 = sshll.u32 %s1077_s6, 4  ;;  %s1078_s9 = smov [#allocation8]   ;;  %s1174_s7 = int_to_ptr.vmem [resolvable:$true] %s205_s7 }
  0x11   : > { %p823_p9 = pneg %p1170_p8  ;;  %s229_s10 = sshll.u32 %s1078_s9, 4  ;;  %s1185_s10 = int_to_ptr.vmem [resolvable:$true] %s229_s10 }
  0x12   : > { %s903_s13 = scalar_lea.hbm %s1380_s1, 4096 }
  0x13   : > { %p1181_p11 = pnand %p823_p9, %p1150_p1  ;;  %p904_p12 = scmp.ne.s32.totalorder %s1380_s1, %s903_s13 }
  0x14   : > { %p910_p5 = scmp.lt.u32.totalorder %s903_s13, %s1380_s1 }
  0x15   : > { %p905_p13 = pneg %p1181_p11 }
  0x17   : > { %p906_p0 = pnand %p905_p13, %p904_p12 }
  0x19   : > { %p907_p3 = pneg %p906_p0 }
  0x1b   : > { %p912_p7 = pnand %p910_p5, %p907_p3 }
  0x1d   : > { %915 = shalt.err (!%p912_p7)
}
  0x1e   : > { %s916_s24 = scalar_lea.vmem %s1174_s7, 4096  ;;  %p924_p1 = scmp.lt.s32.totalorder %s1174_s7, %s1174_s7 }
  0x1f   : > { %p917_p9 = scmp.ne.s32.totalorder %s1174_s7, %s916_s24  ;;  %p925_p12 = scmp.lt.s32.totalorder %s916_s24, %s916_s24 }
  0x21   : > { %p919_p10 = pnand %p917_p9, %p905_p13  ;;  %p926_p0 = por %p925_p12, %p924_p1 }
  0x23   : > { %p920_p6 = pneg %p919_p10 }
  0x25   : > { %p927_p4 = pnand %p926_p0, %p920_p6 }
  0x27   : > { %930 = shalt.err (!%p927_p4)
}
  0x28   : > { %s1079_s25 = smov 256   ;;  %s1080_s6 = smov 16  }
  0x29   : > { %826 = dma.hbm_to_vmem [thread:$0]  (!%p1181_p11), %s1380_s1, 4096, %s1174_s7, [#allocation7], %s1079_s25, %s1079_s25, %s1080_s6  }
  0x2a   : > { %s931_s14 = scalar_lea.hbm %s1382_s3, 4096 }
  0x2b   : > { %p932_p1 = scmp.ne.s32.totalorder %s1382_s3, %s931_s14  ;;  %p938_p10 = scmp.lt.u32.totalorder %s931_s14, %s1382_s3 }
  0x2d   : > { %p934_p4 = pnand %p932_p1, %p905_p13 }
  0x2f   : > { %p935_p6 = pneg %p934_p4 }
  0x31   : > { %p940_p3 = pnand %p938_p10, %p935_p6 }
  0x33   : > { %943 = shalt.err (!%p940_p3)
}
  0x34   : > { %s944_s7 = scalar_lea.vmem %s1185_s10, 4096  ;;  %p952_p12 = scmp.lt.s32.totalorder %s1185_s10, %s1185_s10 }
  0x35   : > { %p945_p5 = scmp.ne.s32.totalorder %s1185_s10, %s944_s7  ;;  %p953_p0 = scmp.lt.s32.totalorder %s944_s7, %s944_s7 }
  0x37   : > { %p947_p7 = pnand %p945_p5, %p905_p13  ;;  %p954_p1 = por %p953_p0, %p952_p12 }
  0x39   : > { %p948_p9 = pneg %p947_p7 }
  0x3b   : > { %p955_p4 = pnand %p954_p1, %p948_p9 }
  0x3d   : > { %958 = shalt.err (!%p955_p4)
}
  0x3e   : > { %s1081_s25 = smov 128   ;;  %s1082_s6 = smov 8  }
  0x3f   : > { %829 = dma.hbm_to_vmem [thread:$0]  (!%p1181_p11), %s1382_s3, 4096, %s1185_s10, [#allocation7], %s1081_s25, %s1081_s25, %s1082_s6  }
  0x40   : > { %s34_s12 = sadd.s32 1, %s1071_s22  ;;  %s41_s13 = sadd.s32 1, %s1063_s20 }
  0x41   : > { %p36_p13 = scmp.ge.s32.totalorder %s34_s12, 2  ;;  %p48_p6 = scmp.ne.s32.totalorder %s1063_s20, %s1059_s19 }
  0x42   : > { %p49_p10 = scmp.eq.s32.totalorder %s1075_s23, 0  ;;  %p840_p3 = scmp.lt.s32.totalorder %s1075_s23, 2 }
  0x43   : > { %s1408_s12 = smov (%p36_p13, %s34_s12), 0  ;;  %p1249_p7 = por %p1154_p2, %p48_p6 }
  0x44   : > { %p50_p5 = por %p49_p10, %p48_p6  ;;  %s38_s8 = ssub.s32 %s1071_s22, %s1408_s12 }
  0x45   : > { %s1395_s14 = scalar_select %p1249_p7, 1, 0 }
  0x46   : > { %s246_s15 = sand.u32 1, %s1063_s20   ;;  %p39_p9 = scmp.eq.s32.totalorder %s38_s8, 0 }
  0x47   : > { %s700_s10 = sshll.u32 %s246_s15, 3  ;;  %s701_s16 = sshll.u32 %s1071_s22, 7 }
  0x48   : > { %s1258_s17 = scalar_select %p39_p9, %s1063_s20, %s41_s13  }
  0x49   : > { %s1263_s25 = scalar_lea.hbm %s1379_s0, %s701_s16  ;;  %s250_s27 = scalar_lea.vmem [#allocation3], %s700_s10 }
  0x4a   : > { %s257_s6 = sshll.u32 %s250_s27, 4  ;;  %p1267_p2 = pnand %p840_p3, %p50_p5  ;;  %s1271_s6 = int_to_ptr.vmem [resolvable:$true] %s257_s6 }
  0x4b   : > { %s247_s11 = scalar_lea.sflag [#allocation4], %s246_s15  ;;  %s959_s13 = scalar_lea.hbm %s1263_s25, 128 }
  0x4c   : > { %p960_p11 = scmp.ne.s32.totalorder %s1263_s25, %s959_s13  ;;  %p961_p12 = pneg %p1267_p2 }
  0x4d   : > { %s964_s16 = scalar_lea.hbm %s1379_s0, 256  ;;  %p965_p4 = scmp.lt.u32.totalorder %s1263_s25, %s1379_s0 }
  0x4e   : > { %p962_p0 = pnand %p961_p12, %p960_p11  ;;  %p966_p13 = scmp.lt.u32.totalorder %s964_s16, %s959_s13 }
  0x4f   : > { %p968_p10 = scmp.lt.u32.totalorder %s959_s13, %s1263_s25 }
  0x50   : > { %p963_p1 = pneg %p962_p0  ;;  %p967_p6 = por %p966_p13, %p965_p4 }
  0x52   : > { %p969_p3 = por %p968_p10, %p967_p6 }
  0x54   : > { %p970_p5 = pnand %p969_p3, %p963_p1 }
  0x56   : > { %973 = shalt.err (!%p970_p5)
}
  0x57   : > { %s974_s15 = scalar_lea.vmem %s1271_s6, 128  ;;  %s1083_s27 = smov [#allocation3]  }
  0x58   : > { %p975_p9 = scmp.ne.s32.totalorder %s1271_s6, %s974_s15  ;;  %s979_s8 = sshll.u32 %s1083_s27, 4  ;;  %s980_s8 = int_to_ptr.vmem [resolvable:$false] %s979_s8 }
  0x59   : > { %s981_s10 = scalar_lea.vmem %s980_s8, 256  ;;  %p982_p7 = scmp.lt.s32.totalorder %s1271_s6, %s980_s8 }
  0x5a   : > { %p977_p11 = pnand %p975_p9, %p961_p12  ;;  %p983_p4 = scmp.lt.s32.totalorder %s981_s10, %s974_s15 }
  0x5c   : > { %p978_p0 = pneg %p977_p11  ;;  %p984_p13 = por %p983_p4, %p982_p7 }
  0x5e   : > { %p985_p6 = pnand %p984_p13, %p978_p0 }
  0x60   : > { %988 = shalt.err (!%p985_p6)
}
  0x61   : > { %833 = dma.hbm_to_vmem [thread:$0]  (!%p1267_p2), %s1263_s25, 128, %s1271_s6, %s247_s11  }
  0x62   : > { %266 = sbr.rel (%p1170_p8) target bundleno = 608 (0x260), region = 40  ;;  %s1301_s13 = sand.u32 (!%p1170_p8), 1, %s1059_s19  }
  0x63   : > { %s703_s16 = sshll.u32 (!%p1170_p8), %s1301_s13, 3  ;;  %s269_s24 = scalar_lea.sflag (!%p1170_p8), [#allocation4], %s1301_s13 }
  0x64   : > { %s1307_s7 = scalar_lea.vmem (!%p1170_p8), [#allocation3], %s703_s16  ;;  %p1397_p7 = scmp.ne.s32.totalorder (!%p1170_p8), %s1391_s28, 0 }
  0x69   : > { %1042 = dma.done.wait (%p1397_p7), %s269_s24, 128  }
  0x6a   : > { %1044 = vsyncadd (%p1397_p7), %s269_s24, 4294967168  ;;  %p1398_p2 = scmp.ne.s32.totalorder %s1389_s26, 0 }
  0x6c   : > { %1046 = dma.done.wait (%p1398_p2), [#allocation7], 8192  }
  0x6d   : > { %1048 = vsyncadd (%p1398_p2), [#allocation7], 4294959104  ;;  %v1084_v0 = vmov 0.0   ;;  %v332_v1 = vld [vmem:[#allocation6 + $0x8] sm:$0xff]  ;;  %v334_v2 = vld [vmem:[#allocation6 + $0x18] sm:$0xff]  ;;  %s709_s6 = sshll.u32 %s1067_s21, 7 }
  0x6e   : > { %439 = vmatprep.mubr.f32.mxu0 %v1084_v0  ;;  %v331_v3 = vld [vmem:[#allocation6] sm:$0xff]  ;;  %v747_v4 = vpack.c.bf16 %v334_v2, %v332_v1  ;;  %v333_v5 = vld [vmem:[#allocation6 + $0x10] sm:$0xff]  ;;  %v336_v6 = vld [vmem:[#allocation6 + $0x28] sm:$0xff]  ;;  %s310_s9 = scalar_lea.vmem [#allocation9], %s703_s16  ;;  %s1330_s8 = scalar_lea.hbm %s1384_s5, %s709_s6 }
  0x6f   : > { %v338_v7 = vld [vmem:[#allocation6 + $0x38] sm:$0xff]  ;;  %v749_v8 = vpack.c.bf16 %v333_v5, %v331_v3  ;;  %v335_v10 = vld [vmem:[#allocation6 + $0x20] sm:$0xff]  ;;  %v337_v11 = vld [vmem:[#allocation6 + $0x30] sm:$0xff]  ;;  %s580_s11 = sshll.u32 %s310_s9, 4  ;;  %s567_s10 = scalar_lea.sflag [#allocation5], %s1301_s13  ;;  %s1332_s11 = int_to_ptr.vmem [resolvable:$true] %s580_s11 }
  0x70   : > { %v751_v9 = vpack.c.bf16 %v338_v7, %v336_v6  ;;  %v340_v12 = vld [vmem:[#allocation6 + $0x48] sm:$0xff]  ;;  %748 = vmatprep.subr.bf16.mxu0 %v747_v4  ;;  %v342_v13 = vld [vmem:[#allocation6 + $0x58] sm:$0xff]  ;;  %v753_v14 = vpack.c.bf16 %v337_v11, %v335_v10  ;;  %v339_v16 = vld [vmem:[#allocation6 + $0x40] sm:$0xff]  ;;  %s989_s24 = scalar_lea.vmem %s1332_s11, 128  ;;  %p1399_p12 = scmp.ne.s32.totalorder %s1395_s14, 0 }
  0x71   : > { %750 = vmatpush1.bf16.msra.mxu0 %v749_v8  ;;  %v755_v15 = vpack.c.bf16 %v342_v13, %v340_v12  ;;  %v341_v17 = vld [vmem:[#allocation6 + $0x50] sm:$0xff]  ;;  %v344_v18 = vld [vmem:[#allocation6 + $0x68] sm:$0xff]  ;;  %v346_v19 = vld [vmem:[#allocation6 + $0x78] sm:$0xff]  ;;  %p990_p8 = scmp.ne.s32.totalorder %s1332_s11, %s989_s24  ;;  %s1085_s21 = smov [#allocation9]  }
  0x72   : > { %752 = vmatprep.subr.bf16.mxu0 %v751_v9  ;;  %v757_v20 = vpack.c.bf16 %v341_v17, %v339_v16  ;;  %v759_v21 = vpack.c.bf16 %v346_v19, %v344_v18  ;;  %v343_v22 = vld [vmem:[#allocation6 + $0x60] sm:$0xff]  ;;  %v345_v23 = vld [vmem:[#allocation6 + $0x70] sm:$0xff]  ;;  %v348_v24 = vld [vmem:[#allocation6 + $0x88] sm:$0xff]  ;;  %s993_s16 = sshll.u32 %s1085_s21, 4  ;;  %s994_s16 = int_to_ptr.vmem [resolvable:$false] %s993_s16 }
  0x73   : > { %v350_v25 = vld [vmem:[#allocation6 + $0x98] sm:$0xff]  ;;  %v347_v26 = vld [vmem:[#allocation6 + $0x80] sm:$0xff]  ;;  %v349_v27 = vld [vmem:[#allocation6 + $0x90] sm:$0xff]  ;;  %v761_v31 = vpack.c.bf16 %v345_v23, %v343_v22  ;;  %p991_p1 = pnand %p990_p8, %p1399_p12  ;;  %p996_p3 = scmp.lt.s32.totalorder %s1332_s11, %s994_s16 }
  0x74   : > { %v473_v28 = vld [vmem:[#allocation8 + $0x80] sm:$0xff]  ;;  %v474_v29 = vld [vmem:[#allocation8 + $0x88] sm:$0xff]  ;;  %v475_v34 = vld [vmem:[#allocation8 + $0x90] sm:$0xff]  ;;  %v763_v36 = vpack.c.bf16 %v350_v25, %v348_v24  ;;  %v765_v46 = vpack.c.bf16 %v349_v27, %v347_v26 }
  0x75   : > { %754 = vmatpush1.bf16.msra.mxu0 %v753_v14  ;;  %v457_v30 = vld [vmem:[#allocation8] sm:$0xff]  ;;  %v779_v32 = vpack.c.bf16 %v474_v29, %v473_v28  ;;  %v458_v33 = vld [vmem:[#allocation8 + $0x8] sm:$0xff]  ;;  %v476_v35 = vld [vmem:[#allocation8 + $0x98] sm:$0xff]  ;;  %p992_p10 = pneg %p991_p1 }
  0x76   : > { %756 = vmatprep.subr.bf16.mxu0 %v755_v15  ;;  %v781_v37 = vpack.c.bf16 %v458_v33, %v457_v30  ;;  %v783_v38 = vpack.c.bf16 %v476_v35, %v475_v34  ;;  %v459_v39 = vld [vmem:[#allocation8 + $0x10] sm:$0xff]  ;;  %v460_v40 = vld [vmem:[#allocation8 + $0x18] sm:$0xff]  ;;  %v477_v41 = vld [vmem:[#allocation8 + $0xa0] sm:$0xff]  ;;  %v365_v34 = vlaneseq }
  0x77   : > { %v352_v42 = vld [vmem:[#allocation6 + $0xa8] sm:$0xff]  ;;  %v354_v43 = vld [vmem:[#allocation6 + $0xb8] sm:$0xff]  ;;  %780 = vmatprep.subr.bf16.mxu1 %v779_v32  ;;  %v785_v45 = vpack.c.bf16 %v460_v40, %v459_v39  ;;  %v461_v48 = vld [vmem:[#allocation8 + $0x20] sm:$0xff] }
  0x78   : > { %v478_v44 = vld [vmem:[#allocation8 + $0xa8] sm:$0xff]  ;;  %782 = vmatpush3.bf16.msra.mxu1 %v781_v37  ;;  %v767_v50 = vpack.c.bf16 %v354_v43, %v352_v42  ;;  %v351_v51 = vld [vmem:[#allocation6 + $0xa0] sm:$0xff]  ;;  %v353_v52 = vld [vmem:[#allocation6 + $0xb0] sm:$0xff]  ;;  %v366_v35 = vshrl.u32 %v365_v34, 7 }
  0x79   : > { %758 = vmatpush1.bf16.msra.mxu0 %v757_v20  ;;  %784 = vmatprep.subr.bf16.mxu1 %v783_v38  ;;  %v787_v47 = vpack.c.bf16 %v478_v44, %v477_v41  ;;  %v462_v49 = vld [vmem:[#allocation8 + $0x28] sm:$0xff]  ;;  %v358_v54 = vld [vmem:[#allocation6 + $0xd8] sm:$0xff]  ;;  %v769_v56 = vpack.c.bf16 %v353_v52, %v351_v51  ;;  %v355_v58 = vld [vmem:[#allocation6 + $0xc0] sm:$0xff] }
  0x7a   : > { %760 = vmatprep.subr.bf16.mxu0 %v759_v21  ;;  %v356_v53 = vld [vmem:[#allocation6 + $0xc8] sm:$0xff]  ;;  %v789_v55 = vpack.c.bf16 %v462_v49, %v461_v48  ;;  %v357_v59 = vld [vmem:[#allocation6 + $0xd0] sm:$0xff]  ;;  %v362_v61 = vld [vmem:[#allocation6 + $0xf8] sm:$0xff]  ;;  %v371_v38 = vsub.s32 1, %v366_v35 }
  0x7b   : > { %v771_v57 = vpack.c.bf16 %v358_v54, %v356_v53  ;;  %v360_v60 = vld [vmem:[#allocation6 + $0xe8] sm:$0xff]  ;;  %v773_v62 = vpack.c.bf16 %v357_v59, %v355_v58  ;;  %v359_v0 = vld [vmem:[#allocation6 + $0xe0] sm:$0xff]  ;;  %v361_v1 = vld [vmem:[#allocation6 + $0xf0] sm:$0xff] }
  0x7c   : > { %786 = vmatpush3.bf16.msra.mxu1 %v785_v45  ;;  %v775_v63 = vpack.c.bf16 %v362_v61, %v360_v60  ;;  %v777_v2 = vpack.c.bf16 %v361_v1, %v359_v0  ;;  %v330_v3 = vld [vmem:[%s1307_s7] sm:$0xff]  ;;  %v481_v10 = vld [vmem:[#allocation8 + $0xc0] sm:$0xff]  ;;  %v482_v11 = vld [vmem:[#allocation8 + $0xc8] sm:$0xff]  ;;  %s995_s7 = scalar_lea.vmem %s994_s16, 256 }
  0x7d   : > { %762 = vmatpush1.bf16.msra.mxu0 %v761_v31  ;;  %788 = vmatprep.subr.bf16.mxu1 %v787_v47  ;;  %v479_v4 = vld [vmem:[#allocation8 + $0xb0] sm:$0xff]  ;;  %v480_v5 = vld [vmem:[#allocation8 + $0xb8] sm:$0xff]  ;;  %v795_v12 = vpack.c.bf16 %v482_v11, %v481_v10  ;;  %v465_v13 = vld [vmem:[#allocation8 + $0x40] sm:$0xff]  ;;  %p997_p5 = scmp.lt.s32.totalorder %s995_s7, %s989_s24 }
  0x7e   : > { %764 = vmatprep.subr.bf16.mxu0 %v763_v36  ;;  %v791_v6 = vpack.c.bf16 %v480_v5, %v479_v4  ;;  %v463_v7 = vld [vmem:[#allocation8 + $0x30] sm:$0xff]  ;;  %v464_v8 = vld [vmem:[#allocation8 + $0x38] sm:$0xff]  ;;  %v466_v14 = vld [vmem:[#allocation8 + $0x48] sm:$0xff]  ;;  %v367_v36 = vsub.s32 0, %v366_v35 }
  0x7f   : > { %v793_v9 = vpack.c.bf16 %v464_v8, %v463_v7  ;;  %v797_v15 = vpack.c.bf16 %v466_v14, %v465_v13  ;;  %v483_v16 = vld [vmem:[#allocation8 + $0xd0] sm:$0xff]  ;;  %v484_v17 = vld [vmem:[#allocation8 + $0xd8] sm:$0xff]  ;;  %v485_v22 = vld [vmem:[#allocation8 + $0xe0] sm:$0xff]  ;;  %p998_p9 = por %p997_p5, %p996_p3 }
  0x80   : > { %790 = vmatpush3.bf16.msra.mxu1 %v789_v55  ;;  %v799_v18 = vpack.c.bf16 %v484_v17, %v483_v16  ;;  %v467_v19 = vld [vmem:[#allocation8 + $0x50] sm:$0xff]  ;;  %v468_v20 = vld [vmem:[#allocation8 + $0x58] sm:$0xff]  ;;  %v486_v23 = vld [vmem:[#allocation8 + $0xe8] sm:$0xff] }
  0x81   : > { %766 = vmatpush1.bf16.msra.mxu0 %v765_v46  ;;  %792 = vmatprep.subr.bf16.mxu1 %v791_v6  ;;  %v801_v21 = vpack.c.bf16 %v468_v20, %v467_v19  ;;  %v803_v24 = vpack.c.bf16 %v486_v23, %v485_v22  ;;  %v469_v25 = vld [vmem:[#allocation8 + $0x60] sm:$0xff]  ;;  %v470_v26 = vld [vmem:[#allocation8 + $0x68] sm:$0xff]  ;;  %v487_v28 = vld [vmem:[#allocation8 + $0xf0] sm:$0xff]  ;;  %p999_p11 = pnand %p998_p9, %p992_p10 }
  0x82   : > { %768 = vmatprep.subr.bf16.mxu0 %v767_v50  ;;  %v805_v27 = vpack.c.bf16 %v470_v26, %v469_v25  ;;  %v488_v29 = vld [vmem:[#allocation8 + $0xf8] sm:$0xff]  ;;  %v471_v31 = vld [vmem:[#allocation8 + $0x70] sm:$0xff] }
  0x83   : > { %v807_v30 = vpack.c.bf16 %v488_v29, %v487_v28  ;;  %v472_v32 = vld [vmem:[#allocation8 + $0x78] sm:$0xff]  ;;  %v363_v37 = vld [vmem:[%s1381_s2] sm:$0x3] }
  0x84   : > { %794 = vmatpush3.bf16.msra.mxu1 %v793_v9  ;;  %v809_v33 = vpack.c.bf16 %v472_v32, %v471_v31  ;;  %v368_v39 = vrot.slane %v363_v37, %v367_v36  ;;  %v372_v40 = vrot.slane %v363_v37, %v371_v38 }
  0x85   : > { %770 = vmatpush1.bf16.msra.mxu0 %v769_v56  ;;  %796 = vmatprep.subr.bf16.mxu1 %v795_v12  ;;  %v707_v56 = vld [vmem:[%s1383_s4] ss:$0 sm:$0xff] }
  0x86   : > { %772 = vmatprep.subr.bf16.mxu0 %v771_v57 }
  0x88   : > { %798 = vmatpush3.bf16.msra.mxu1 %v797_v15 }
  0x89   : > { %774 = vmatpush1.bf16.msra.mxu0 %v773_v62  ;;  %800 = vmatprep.subr.bf16.mxu1 %v799_v18 }
  0x8a   : > { %776 = vmatprep.subr.bf16.mxu0 %v775_v63 }
  0x8c   : > { %802 = vmatpush3.bf16.msra.mxu1 %v801_v21 }
  0x8d   : > { %778 = vmatpush1.bf16.msra.mxu0 %v777_v2  ;;  %804 = vmatprep.subr.bf16.mxu1 %v803_v24 }
  0x90   : > { %440 = vmatmul.mubr.f32.vlgmr.msra.gmra.mrb[0].mxu0 %v330_v3  ;;  %806 = vmatpush3.bf16.msra.mxu1 %v805_v27 }
  0x91   : > { %808 = vmatprep.subr.bf16.mxu1 %v807_v30 }
  0x94   : > { %810 = vmatpush3.bf16.msra.mxu1 %v809_v33 }
 0x163   : > { %v441_v41 = vpop.f32.mrb[0].mxu0 }
 0x164   : > { %v442_v42 = vadd.f32 %v441_v41, %v368_v39  ;;  %v443_v43 = vpop.f32.mrb[1].mxu0 }
 0x165   : > { %v444_v44 = vadd.f32 %v443_v43, %v372_v40 }
 0x166   : > { %v448_v45 = vmul.f32 0.70710677, %v442_v42  ;;  %v446_v52 = vmul.f32 0.5, %v442_v42 }
 0x167   : > { %v449_v46 = vmul.f32 0.70710677, %v444_v44  ;;  %v447_v50 = vmul.f32 0.5, %v444_v44 }
 0x168   : > { %899 = verf.f32 %v448_v45 }
 0x169   : > { %901 = verf.f32 %v449_v46 }
 0x172   : > { %v900_v47 = vpop.eup %899 }
 0x173   : > { %v902_v48 = vpop.eup %901  ;;  %v452_v49 = vadd.f32 1.0, %v900_v47 }
 0x174   : > { %v453_v51 = vadd.f32 1.0, %v902_v48 }
 0x175   : > { %v454_v54 = vmul.f32 %v452_v49, %v446_v52 }
 0x176   : > { %v455_v53 = vmul.f32 %v453_v51, %v447_v50 }
 0x178   : > { %553 = vmatprep.mubr.f32.mxu1 %v455_v53 }
 0x179   : > { %554 = vmatmul.mubr.f32.vlgmr.msra.gmra.mrb[0].mxu1 %v454_v54 }
 0x24c   : > { %v744_v55 = vpop.f32.mrb[0].mxu1 }
 0x24d   : > { %v745_v57 = vpop.f32.mrb[1].mxu1 }
 0x24e   : > { %v746_v58 = vadd.f32 %v745_v57, %v744_v55 }
 0x250   : > { %v559_v59 = vadd.f32 %v746_v58, %v707_v56 }
 0x252   : > { %565 = vst [vmem:[%s310_s9] sm:$0xff] %v559_v59 }
 0x253   : > { %1002 = shalt.err (!%p999_p11)
}
 0x254   : > { %s1003_s13 = scalar_lea.hbm %s1330_s8, 128  ;;  %s1007_s30 = scalar_lea.hbm %s1384_s5, 256 }
 0x255   : > { %p1004_p0 = scmp.ne.s32.totalorder %s1330_s8, %s1003_s13  ;;  %p1008_p6 = scmp.lt.u32.totalorder %s1330_s8, %s1384_s5 }
 0x256   : > { %p1009_p7 = scmp.lt.u32.totalorder %s1007_s30, %s1003_s13  ;;  %p1011_p8 = scmp.lt.u32.totalorder %s1003_s13, %s1330_s8 }
 0x257   : > { %p1005_p4 = pnand %p1004_p0, %p1399_p12 }
 0x258   : > { %p1010_p2 = por %p1009_p7, %p1008_p6 }
 0x259   : > { %p1006_p13 = pneg %p1005_p4 }
 0x25a   : > { %p1012_p1 = por %p1011_p8, %p1010_p2 }
 0x25c   : > { %p1013_p10 = pnand %p1012_p1, %p1006_p13 }
 0x25e   : > { %1016 = shalt.err (!%p1013_p10)
}
 0x25f   : > { %821 = dma.vmem_to_hbm [thread:$0]  (%p1399_p12), %s1332_s11, 128, %s1330_s8, %s567_s10  }
 0x260 PF: > { %s592_s9 = sand.u32 1, %s1055_s18   ;;  %p1400_p3 = scmp.ne.s32.totalorder %s1392_s29, 0 }
 0x261   : > { %p1401_p5 = scmp.ge.s32.totalorder %s1075_s23, 2  ;;  %s593_s15 = scalar_lea.sflag [#allocation5], %s592_s9 }
 0x263   : > { %p835_p9 = pnand %p1401_p5, %p1400_p3 }
 0x265   : > { %1050 = dma.done.wait (!%p835_p9), %s593_s15, 128  }
 0x266   : > { %1052 = vsyncadd (!%p835_p9), %s593_s15, 4294967168  ;;  %s22_s23 = sadd.s32 1, %s1075_s23   ;;  %s1402_s18 = smov %s1059_s19 }
 0x267   : > { %p19_p11 = scmp.ge.s32.totalorder %s22_s23, 4   ;;  %s1403_s19 = smov %s1063_s20 }
 0x268   : > { %s1404_s20 = smov %s1258_s17  ;;  %s1405_s21 = smov %s1071_s22 }
 0x269   : > { %s1406_s22 = smov %s1408_s12  ;;  %21 = sbr.rel (!%p19_p11) target bundleno = 7 (0x7), region = 106 }
 0x270   :  { %598 = vsyncpa [#allocation4], 1 }
 0x271   :  { %600 = vsyncpa [#allocation4 + $0x1], 1 }
 0x272   :  { %601 = vsyncpa [#allocation7], 1 }
 0x273   :  { %602 = vsyncpa [#allocation5], 1 }
 0x274   :  { %604 = vsyncpa [#allocation5 + $0x1], 1 }

</bundles_post_ra>
